<compile_context>
chip_gen: v6e
topology: v6e:2x2x1
jax: 0.10.0
libtpu: 0.0.40
codegen_flags: <defaults>
</compile_context>

<pallas_src>
import functools
import math

import jax
import jax.numpy as jnp
from jax import lax
from jax.experimental import pallas as pl
from jax.experimental.pallas import tpu as pltpu

_MASK_VALUE = -1e30  # large-negative instead of -inf; exp() underflows to 0 either way


def _causal_mha_kernel(x_ref, wqkv_ref, bqkv_ref, wo_ref, bo_ref, o_ref, *,
                       num_heads, head_dim, seq_len, compute_dtype):
    # x_ref : (rows, E) with rows = batch_block * S   (batch rows flattened)
    # wqkv  : (E, 3E)   lane-dense fused QKV weight, columns ordered (k=3, h, d),
    #                   q columns pre-scaled by 1/sqrt(D)
    # bqkv  : (1, 3E)   wo : (E, E)   bo : (1, E)
    rows, E = x_ref.shape
    H, D, S = num_heads, head_dim, seq_len
    bb = rows // S
    G = bb * H
    cd = compute_dtype
    f32 = jnp.float32

    # --- fused QKV projection: one lane-dense MXU matmul over the whole block --
    qkv = jnp.dot(x_ref[...].astype(cd), wqkv_ref[...].astype(cd),
                  preferred_element_type=f32) + bqkv_ref[...]          # (rows, 3E) f32

    # --- lane-preserving head split: wide slices + reshape (no stack/concat) ---
    def to_heads(cols):                                   # (rows, E) -> (G, S, D)
        t = cols.reshape(bb, S, H, D)
        return jnp.transpose(t, (0, 2, 1, 3)).reshape(G, S, D)

    q = to_heads(qkv[:, :E]).astype(cd)         # scale already folded into wqkv
    k = to_heads(qkv[:, E:2 * E]).astype(cd)
    v = to_heads(qkv[:, 2 * E:]).astype(cd)

    # (batch*head)-batched attention scores.  NOTE: the contraction depth is only
    # D=8 (<<128/256 MXU depth) so these einsums are dominated by MXU fill/drain;
    # the kernel is latency-bound here and bf16 inputs won't speed them up.
    scores = jnp.einsum('gsd,gtd->gst', q, k,
                        preferred_element_type=f32)                    # (G, S, S)

    # causal mask (kept in f32): query i may only attend to keys j <= i
    row_id = lax.broadcasted_iota(jnp.int32, (S, S), 0)
    col_id = lax.broadcasted_iota(jnp.int32, (S, S), 1)
    scores = jnp.where((col_id <= row_id)[None], scores, _MASK_VALUE)

    # --- softmax (all f32, exact divide for parity with torch F.softmax) ------
    m = jnp.max(scores, axis=-1, keepdims=True)                        # (G, S, 1)
    p = jnp.exp(scores - m)                                            # (G, S, S)
    p = p / jnp.sum(p, axis=-1, keepdims=True)

    pv = jnp.einsum('gst,gtd->gsd', p.astype(cd), v,
                    preferred_element_type=f32)                        # (G, S, D)

    # 'b h s d -> b s (h d)': back to a lane-contiguous (rows, E) slab
    out_cat = jnp.transpose(pv.reshape(bb, H, S, D), (0, 2, 1, 3)).reshape(rows, E)

    # --- output projection (lane-dense MXU matmul) -----------------------------
    out = jnp.dot(out_cat.astype(cd), wo_ref[...].astype(cd),
                  preferred_element_type=f32) + bo_ref[...]            # (rows, E)
    o_ref[...] = out.astype(o_ref.dtype)


def prepare_params(W_qkv, b_qkv, W_out, b_out, *, num_heads, head_dim):
    """One-time param prep (do this OUTSIDE the hot path).

    torch nn.Linear weights are (out, in); transpose once to lane-dense (E, 3E)
    / (E, E) and fold 1/sqrt(head_dim) into the q columns of the fused QKV
    weight and bias, so the kernel needs no per-call transposes or q scaling.
    """
    E = num_heads * head_dim
    scale = 1.0 / math.sqrt(head_dim)
    col_scale = jnp.concatenate([jnp.full((E,), scale, W_qkv.dtype),
                                 jnp.ones((2 * E,), W_qkv.dtype)])      # (3E,)
    wqkv = W_qkv.T * col_scale[None, :]                                 # (E, 3E)
    bqkv = (b_qkv * col_scale).reshape(1, 3 * E)                        # (1, 3E)
    wo = W_out.T                                                        # (E, E)
    bo = b_out.reshape(1, E)                                            # (1, E)
    return wqkv, bqkv, wo, bo


def causal_self_attention(x, wqkv, bqkv, wo, bo, *, num_heads, head_dim,
                          batch_block=None, compute_dtype=None):
    """x: (B, S, E); wqkv/bqkv/wo/bo from prepare_params (lane-dense layout).

    Assumes seq_len == pos_embed_dim (the torch masked_fill requires this).
    batch_block: batch elements per grid step.  Default B (single grid step —
      best on single-TC v5e/v6e).  On v7x set batch_block = B // 2 so the
      "parallel" grid keeps both TensorCores busy.
    compute_dtype: MXU input dtype (e.g. jnp.bfloat16 on v6e/v7x); softmax and
      accumulation are always f32.  Defaults to x.dtype.
    """
    B, S, E = x.shape
    assert E == num_heads * head_dim
    if compute_dtype is None:
        compute_dtype = x.dtype
    if batch_block is None:
        batch_block = B                       # collapse grid: one step, one DMA
    assert B % batch_block == 0
    rows = batch_block * S

    # (B, S, E) -> (B*S, E): contiguous leading-dim merge, free in XLA, and it
    # presents the kernel with a lane-dense 2-D slab for the projections.
    x2 = x.reshape(B * S, E)

    kernel = functools.partial(_causal_mha_kernel, num_heads=num_heads,
                               head_dim=head_dim, seq_len=S,
                               compute_dtype=compute_dtype)

    out = pl.pallas_call(
        kernel,
        out_shape=jax.ShapeDtypeStruct((B * S, E), x.dtype),
        grid_spec=pltpu.PrefetchScalarGridSpec(
            num_scalar_prefetch=0,
            grid=(B // batch_block,),
            in_specs=[
                pl.BlockSpec((rows, E), lambda i: (i, 0)),       # x rows
                pl.BlockSpec((E, 3 * E), lambda i: (0, 0)),      # wqkv
                pl.BlockSpec((1, 3 * E), lambda i: (0, 0)),      # bqkv
                pl.BlockSpec((E, E), lambda i: (0, 0)),          # wo
                pl.BlockSpec((1, E), lambda i: (0, 0)),          # bo
            ],
            out_specs=pl.BlockSpec((rows, E), lambda i: (i, 0)),
        ),
        compiler_params=pltpu.CompilerParams(
            dimension_semantics=("parallel",),     # shards batch blocks over v7x TCs
            vmem_limit_bytes=32 * 1024 * 1024,     # safe default on v5e/v6e/v7x
        ),
    )(x2, wqkv, bqkv, wo, bo)
    return out.reshape(B, S, E)


def causal_self_attention_reference(x, W_qkv, b_qkv, W_out, b_out, *, num_heads, head_dim):
    """Pure-JAX replica of the PyTorch CausalSelfAttention.forward for validation."""
    B, S, E = x.shape
    qkv = x @ W_qkv.T + b_qkv                                    # (B, S, 3E)
    qkv = qkv.reshape(B, S, 3, num_heads, head_dim)
    qkv = jnp.transpose(qkv, (2, 0, 3, 1, 4))                    # (3, B, H, S, D)
    q, k, v = qkv[0], qkv[1], qkv[2]
    att = jnp.einsum('bhid,bhjd->bhij', q, k) / math.sqrt(head_dim)
    mask = jnp.tril(jnp.ones((S, S), dtype=bool))                # causal: j <= i
    att = jnp.where(mask[None, None], att, -jnp.inf)
    att = jax.nn.softmax(att, axis=-1)
    out = jnp.einsum('bhij,bhjd->bhid', att, v)
    out = jnp.transpose(out, (0, 2, 1, 3)).reshape(B, S, E)      # 'b h s d -> b s (h d)'
    return out @ W_out.T + b_out


if __name__ == "__main__":
    num_heads, head_dim = 4, 8
    embed_dim = num_heads * head_dim        # 32
    B, S = 2, 8                             # pos_embed_dim == S for the causal mask

    key = jax.random.PRNGKey(0)
    kx, k1, k2, k3, k4 = jax.random.split(key, 5)

    x = jax.random.normal(kx, (B, S, embed_dim), dtype=jnp.float32)

    # deterministic nn.Linear-style parameter init (uniform in +-1/sqrt(fan_in))
    bound = 1.0 / math.sqrt(embed_dim)
    W_qkv = jax.random.uniform(k1, (3 * embed_dim, embed_dim), jnp.float32, -bound, bound)
    b_qkv = jax.random.uniform(k2, (3 * embed_dim,), jnp.float32, -bound, bound)
    W_out = jax.random.uniform(k3, (embed_dim, embed_dim), jnp.float32, -bound, bound)
    b_out = jax.random.uniform(k4, (embed_dim,), jnp.float32, -bound, bound)

    # one-time weight prep (transpose + fold 1/sqrt(D) into q columns)
    wqkv, bqkv, wo, bo = prepare_params(W_qkv, b_qkv, W_out, b_out,
                                        num_heads=num_heads, head_dim=head_dim)

    out = causal_self_attention(x, wqkv, bqkv, wo, bo,
                                num_heads=num_heads, head_dim=head_dim)
    out = jax.block_until_ready(out)

    ref = causal_self_attention_reference(x, W_qkv, b_qkv, W_out, b_out,
                                          num_heads=num_heads, head_dim=head_dim)
    assert out.shape == (B, S, embed_dim)
    max_err = float(jnp.max(jnp.abs(out - ref)))
    assert jnp.allclose(out, ref, rtol=1e-4, atol=1e-4), f"mismatch vs reference (max abs err {max_err})"

    print("KERNEL_OK")
</pallas_src>

<mosaic_0001>
module attributes {stable_mosaic.version = 11 : i64} {
  func.func @_causal_mha_kernel(%arg0: i32, %arg1: memref<16x32xf32, #tpu.memory_space<vmem>>, %arg2: memref<32x96xf32, #tpu.memory_space<vmem>>, %arg3: memref<1x96xf32, #tpu.memory_space<vmem>>, %arg4: memref<32x32xf32, #tpu.memory_space<vmem>>, %arg5: memref<1x32xf32, #tpu.memory_space<vmem>>, %arg6: memref<16x32xf32, #tpu.memory_space<vmem>>) attributes {dimension_semantics = [#tpu.dimension_semantics<parallel>], iteration_bounds = array<i64: 1>, scalar_prefetch = 0 : i64, scratch_operands = 0 : i64, tpu.core_type = #tpu.core_type<tc>, window_params = [{transform_indices = @transform_0, window_bounds = array<i64: 16, 32>}, {pipeline_mode = #tpu.pipeline_mode<synchronous>, transform_indices = @transform_1, window_bounds = array<i64: 32, 96>}, {pipeline_mode = #tpu.pipeline_mode<synchronous>, transform_indices = @transform_2, window_bounds = array<i64: 1, 96>}, {pipeline_mode = #tpu.pipeline_mode<synchronous>, transform_indices = @transform_3, window_bounds = array<i64: 32, 32>}, {pipeline_mode = #tpu.pipeline_mode<synchronous>, transform_indices = @transform_4, window_bounds = array<i64: 1, 32>}, {transform_indices = @transform_5, window_bounds = array<i64: 16, 32>}]} {
    %c0 = arith.constant 0 : index
    %c0_0 = arith.constant 0 : index
    %0 = vector.load %arg1[%c0, %c0_0] : memref<16x32xf32, #tpu.memory_space<vmem>>, vector<16x32xf32>
    %c0_1 = arith.constant 0 : index
    %c0_2 = arith.constant 0 : index
    %1 = vector.load %arg2[%c0_1, %c0_2] : memref<32x96xf32, #tpu.memory_space<vmem>>, vector<32x96xf32>
    %cst = arith.constant dense<0.000000e+00> : vector<16x96xf32>
    %2 = tpu.matmul %0, %1, %cst {dimension_numbers = #tpu.dot_dimension_numbers<[1], [0], [0], [1], [0, 0, 1, 1], [], []>} : vector<16x32xf32>, vector<32x96xf32>, vector<16x96xf32> -> vector<16x96xf32>
    %c0_3 = arith.constant 0 : index
    %c0_4 = arith.constant 0 : index
    %3 = vector.load %arg3[%c0_3, %c0_4] : memref<1x96xf32, #tpu.memory_space<vmem>>, vector<1x96xf32>
    %4 = vector.broadcast %3 : vector<1x96xf32> to vector<16x96xf32>
    %5 = arith.addf %2, %4 : vector<16x96xf32>
    %6 = vector.extract_strided_slice %5 {offsets = [0, 0], sizes = [16, 32], strides = [1, 1]} : vector<16x96xf32> to vector<16x32xf32>
    %7 = vector.shape_cast %6 : vector<16x32xf32> to vector<2x8x4x8xf32>
    %8 = tpu.transpose %7, [0, 2, 1, 3] : vector<2x8x4x8xf32> -> vector<2x4x8x8xf32>
    %9 = vector.shape_cast %8 : vector<2x4x8x8xf32> to vector<8x8x8xf32>
    %10 = vector.extract_strided_slice %5 {offsets = [0, 32], sizes = [16, 32], strides = [1, 1]} : vector<16x96xf32> to vector<16x32xf32>
    %11 = vector.shape_cast %10 : vector<16x32xf32> to vector<2x8x4x8xf32>
    %12 = tpu.transpose %11, [0, 2, 1, 3] : vector<2x8x4x8xf32> -> vector<2x4x8x8xf32>
    %13 = vector.shape_cast %12 : vector<2x4x8x8xf32> to vector<8x8x8xf32>
    %14 = vector.extract_strided_slice %5 {offsets = [0, 64], sizes = [16, 32], strides = [1, 1]} : vector<16x96xf32> to vector<16x32xf32>
    %15 = vector.shape_cast %14 : vector<16x32xf32> to vector<2x8x4x8xf32>
    %16 = tpu.transpose %15, [0, 2, 1, 3] : vector<2x8x4x8xf32> -> vector<2x4x8x8xf32>
    %17 = vector.shape_cast %16 : vector<2x4x8x8xf32> to vector<8x8x8xf32>
    "tpu.trace_start"() <{level = 10 : i32, message = "gsd,gtd->gst"}> : () -> ()
    %cst_5 = arith.constant dense<0.000000e+00> : vector<8x8x8xf32>
    %18 = tpu.matmul %9, %13, %cst_5 {dimension_numbers = #tpu.dot_dimension_numbers<[2], [2], [1], [1], [0, 0, 0, 1, 1, 1], [0], [0]>} : vector<8x8x8xf32>, vector<8x8x8xf32>, vector<8x8x8xf32> -> vector<8x8x8xf32>
    "tpu.trace_stop"() : () -> ()
    %19 = tpu.iota {dimensions = array<i32: 0>} : vector<8x8xi32>
    %20 = tpu.iota {dimensions = array<i32: 1>} : vector<8x8xi32>
    %21 = arith.cmpi sle, %20, %19 : vector<8x8xi32>
    %22 = vector.shape_cast %21 : vector<8x8xi1> to vector<1x8x8xi1>
    %cst_6 = arith.constant -1.000000e+30 : f32
    %23 = vector.shape_cast %22 : vector<1x8x8xi1> to vector<1x8x8xi1>
    %24 = vector.broadcast %23 : vector<1x8x8xi1> to vector<8x8x8xi1>
    %25 = vector.broadcast %cst_6 : f32 to vector<8x8x8xf32>
    %26 = arith.select %24, %18, %25 : vector<8x8x8xi1>, vector<8x8x8xf32>
    %cst_7 = arith.constant dense<0xFF800000> : vector<8x8xf32>
    %27 = vector.multi_reduction <maximumf>, %26, %cst_7 [2] : vector<8x8x8xf32> to vector<8x8xf32>
    %28 = vector.shape_cast %27 : vector<8x8xf32> to vector<8x8x1xf32>
    %29 = vector.broadcast %28 : vector<8x8x1xf32> to vector<8x8x8xf32>
    %30 = arith.subf %26, %29 : vector<8x8x8xf32>
    %31 = math.exp %30 : vector<8x8x8xf32>
    %cst_8 = arith.constant dense<0.000000e+00> : vector<8x8xf32>
    %32 = vector.multi_reduction <add>, %31, %cst_8 [2] : vector<8x8x8xf32> to vector<8x8xf32>
    %33 = vector.shape_cast %32 : vector<8x8xf32> to vector<8x8x1xf32>
    %34 = vector.broadcast %33 : vector<8x8x1xf32> to vector<8x8x8xf32>
    %35 = arith.divf %31, %34 : vector<8x8x8xf32>
    "tpu.trace_start"() <{level = 10 : i32, message = "gst,gtd->gsd"}> : () -> ()
    %cst_9 = arith.constant dense<0.000000e+00> : vector<8x8x8xf32>
    %36 = tpu.matmul %35, %17, %cst_9 {dimension_numbers = #tpu.dot_dimension_numbers<[2], [1], [1], [2], [0, 0, 0, 1, 1, 2], [0], [0]>} : vector<8x8x8xf32>, vector<8x8x8xf32>, vector<8x8x8xf32> -> vector<8x8x8xf32>
    "tpu.trace_stop"() : () -> ()
    %37 = vector.shape_cast %36 : vector<8x8x8xf32> to vector<2x4x8x8xf32>
    %38 = tpu.transpose %37, [0, 2, 1, 3] : vector<2x4x8x8xf32> -> vector<2x8x4x8xf32>
    %39 = vector.shape_cast %38 : vector<2x8x4x8xf32> to vector<16x32xf32>
    %c0_10 = arith.constant 0 : index
    %c0_11 = arith.constant 0 : index
    %40 = vector.load %arg4[%c0_10, %c0_11] : memref<32x32xf32, #tpu.memory_space<vmem>>, vector<32x32xf32>
    %cst_12 = arith.constant dense<0.000000e+00> : vector<16x32xf32>
    %41 = tpu.matmul %39, %40, %cst_12 {dimension_numbers = #tpu.dot_dimension_numbers<[1], [0], [0], [1], [0, 0, 1, 1], [], []>} : vector<16x32xf32>, vector<32x32xf32>, vector<16x32xf32> -> vector<16x32xf32>
    %c0_13 = arith.constant 0 : index
    %c0_14 = arith.constant 0 : index
    %42 = vector.load %arg5[%c0_13, %c0_14] : memref<1x32xf32, #tpu.memory_space<vmem>>, vector<1x32xf32>
    %43 = vector.broadcast %42 : vector<1x32xf32> to vector<16x32xf32>
    %44 = arith.addf %41, %43 : vector<16x32xf32>
    %c0_15 = arith.constant 0 : index
    %c0_16 = arith.constant 0 : index
    %45 = vector.load %arg6[%c0_15, %c0_16] : memref<16x32xf32, #tpu.memory_space<vmem>>, vector<16x32xf32>
    tpu.vector_store %arg6[%c0_15, %c0_16], %44 {strides = array<i32>} : memref<16x32xf32, #tpu.memory_space<vmem>>, vector<16x32xf32>,
    return
  }
  func.func @transform_0(%arg0: i32) -> (i32, i32) {
    %c0_i32 = arith.constant 0 : i32
    %c0_i32_0 = arith.constant 0 : i32
    return %arg0, %c0_i32 : i32, i32
  }
  func.func @transform_1(%arg0: i32) -> (i32, i32) {
    %c0_i32 = arith.constant 0 : i32
    %c0_i32_0 = arith.constant 0 : i32
    %c0_i32_1 = arith.constant 0 : i32
    return %c0_i32, %c0_i32_0 : i32, i32
  }
  func.func @transform_2(%arg0: i32) -> (i32, i32) {
    %c0_i32 = arith.constant 0 : i32
    %c0_i32_0 = arith.constant 0 : i32
    %c0_i32_1 = arith.constant 0 : i32
    return %c0_i32, %c0_i32_0 : i32, i32
  }
  func.func @transform_3(%arg0: i32) -> (i32, i32) {
    %c0_i32 = arith.constant 0 : i32
    %c0_i32_0 = arith.constant 0 : i32
    %c0_i32_1 = arith.constant 0 : i32
    return %c0_i32, %c0_i32_0 : i32, i32
  }
  func.func @transform_4(%arg0: i32) -> (i32, i32) {
    %c0_i32 = arith.constant 0 : i32
    %c0_i32_0 = arith.constant 0 : i32
    %c0_i32_1 = arith.constant 0 : i32
    return %c0_i32, %c0_i32_0 : i32, i32
  }
  func.func @transform_5(%arg0: i32) -> (i32, i32) {
    %c0_i32 = arith.constant 0 : i32
    %c0_i32_0 = arith.constant 0 : i32
    return %arg0, %c0_i32 : i32, i32
  }
}

</mosaic_0001>

<bundles_post_ra>
// kernel: tpu_custom_call.1
= control target key start
LH: loop header
LB: loop body
LE: loop exit
PB: predicated region body
PF: predicated region fallthrough
CT: control target
= control target key end

     0   :  { %10 = vsyncpa [#allocation3], 0  ;;  %s3537_s0 = inlined_call_operand.hbm [shape: f32[16,32], index: 0, kind: input, shape index: {}]   ;;  %s3538_s1 = inlined_call_operand.hbm [shape: f32[32,96], index: 1, kind: input, shape index: {}]   ;;  %s3539_s2 = inlined_call_operand.vmem [shape: f32[1,96], index: 2, kind: input, shape index: {}]   ;;  %s3540_s3 = inlined_call_operand.hbm [shape: f32[32,32], index: 3, kind: input, shape index: {}]   ;;  %s3541_s4 = inlined_call_operand.vmem [shape: f32[1,32], index: 4, kind: input, shape index: {}]   ;;  %s3542_s5 = inlined_call_operand.hbm [shape: f32[16,32], index: 5, kind: output, shape index: {}]  }
   0x1   :  { %11 = vsyncpa [#allocation6], 0 }
   0x2   :  { %12 = vsyncpa [#allocation4], 0  ;;  %s3080_s18 = smov [#allocation5]   ;;  %s3081_s20 = smov [#allocation2]  }
   0x3   :  { %s30_s19 = sshll.u32 %s3080_s18, 4  ;;  %s18_s21 = sshll.u32 %s3081_s20, 4  ;;  %s31_s19 = int_to_ptr.vmem [resolvable:$true] %s30_s19  ;;  %s19_s21 = int_to_ptr.vmem [resolvable:$true] %s18_s21 }
   0x4   :  { %s3002_s22 = scalar_lea.vmem %s31_s19, 512  ;;  %p3007_p1 = scmp.lt.s32.totalorder %s31_s19, %s31_s19 }
   0x5   :  { %p3003_p0 = scmp.ne.s32.totalorder %s31_s19, %s3002_s22  ;;  %p3008_p2 = scmp.lt.s32.totalorder %s3002_s22, %s3002_s22 }
   0x7   :  { %p3009_p3 = por %p3008_p2, %p3007_p1 }
   0x9   :  { %p3010_p4 = pnand %p3009_p3, %p3003_p0 }
   0xb   :  { %3013 = shalt.err (!%p3010_p4)
}
   0xc   :  { %s3082_s23 = smov 128   ;;  %s3083_s24 = smov 8  }
   0xd   :  { %36 = dma.hbm_to_vmem [thread:$0]  %s3538_s1, 512, %s31_s19, [#allocation6], %s3082_s23, %s3082_s23, %s3083_s24  }
   0xe   :  { %s3022_s27 = scalar_lea.vmem %s19_s21, 256  ;;  %p3027_p6 = scmp.lt.s32.totalorder %s19_s21, %s19_s21 }
   0xf   :  { %p3023_p5 = scmp.ne.s32.totalorder %s19_s21, %s3022_s27  ;;  %p3028_p7 = scmp.lt.s32.totalorder %s3022_s27, %s3022_s27 }
  0x11   :  { %p3029_p8 = por %p3028_p7, %p3027_p6 }
  0x13   :  { %p3030_p9 = pnand %p3029_p8, %p3023_p5 }
  0x15   :  { %3033 = shalt.err (!%p3030_p9)
}
  0x16   :  { %24 = dma.hbm_to_vmem [thread:$0]  %s3537_s0, 256, %s19_s21, [#allocation3], %s3082_s23, %s3082_s23, %s3083_s24  }
  0x17   :  { %s3084_s30 = smov [#allocation7]  }
  0x18   :  { %s44_s6 = sshll.u32 %s3084_s30, 4  ;;  %s45_s6 = int_to_ptr.vmem [resolvable:$true] %s44_s6 }
  0x19   :  { %s3042_s7 = scalar_lea.vmem %s45_s6, 512  ;;  %p3047_p11 = scmp.lt.s32.totalorder %s45_s6, %s45_s6 }
  0x1a   :  { %p3043_p10 = scmp.ne.s32.totalorder %s45_s6, %s3042_s7  ;;  %p3048_p12 = scmp.lt.s32.totalorder %s3042_s7, %s3042_s7 }
  0x1c   :  { %p3049_p13 = por %p3048_p12, %p3047_p11 }
  0x1e   :  { %p3050_p0 = pnand %p3049_p13, %p3043_p10 }
  0x20   :  { %3053 = shalt.err (!%p3050_p0)
}
  0x21   :  { %50 = dma.hbm_to_vmem [thread:$0]  %s3540_s3, 512, %s45_s6, [#allocation6], %s3082_s23, %s3082_s23, %s3083_s24  }
  0x22   :  { %3074 = dma.done.wait [#allocation3], 256  }
  0x23   :  { %3075 = vsyncadd [#allocation3], 4294967040 }
  0x24   :  { %3076 = dma.done.wait [#allocation6], 1024  }
  0x25   :  { %3077 = vsyncadd [#allocation6], 4294966272  ;;  %vm75_vm0 = vcmask 261120   ;;  %v67_v0 = vld [vmem:[#allocation5 + $0x18] sm:$0xff]  ;;  %v66_v1 = vld [vmem:[#allocation5 + $0x10] sm:$0xff]  ;;  %s3085_s9 = smov 104   ;;  %v182_v20 = vlaneseq }
  0x26   :  { %2843 = vmatprep.subr.mxu0 %v67_v0  ;;  %v62_v2 = vld [vmem:[#allocation2] sm:$0xff]  ;;  %v65_v3 = vld [vmem:[#allocation5 + $0x8] sm:$0xff]  ;;  %v64_v4 = vld [vmem:[#allocation5] sm:$0xff]  ;;  %s3086_s10 = smov 120   ;;  %s3087_s11 = smov 112   ;;  %v3089_v17 = vmov 0.0  }
  0x27   :  { %2844 = vmatpush3.msra.mxu0 %v67_v0  ;;  %2851 = vmatprep.mubr.msk.f32.mxu0 %vm75_vm0, %v62_v2  ;;  %v63_v5 = vld [vmem:[#allocation2 + $0x8] sm:$0xff]  ;;  %v2753_v7 = vld [vmem:[%s3539_s2] ss:$0 sm:$0xff]  ;;  %s3088_s12 = smov 96   ;;  %s3090_s2 = smov 64   ;;  %vm3091_vm1 = vmmov 0  }
  0x28   :  { %2845 = vmatprep.subr.mxu0 %v66_v1  ;;  %2854 = vmatprep.subr.mxu1 %v3089_v17  ;;  %v3092_v18 = vmov 1983009808   ;;  %v3180_v22 = vshrl.u32 %v182_v20, 7  ;;  %v3093_v23 = vmov 1934713408   ;;  %vm1041_vm2 = vcmask 64512  }
  0x29   :  { %2846 = vmatpush3.msra.mxu0 %v66_v1  ;;  %2856 = vmatprep.mubr.msk.f32.mxu1 %vm3091_vm1, %v3089_v17  ;;  %v180_v19 = vunpack.c.l.s4 %v3092_v18  ;;  %v212_v24 = vunpack.c.l.s4 %v3093_v23  ;;  %s3094_s13 = smov 16   ;;  %s3095_s14 = smov 24   ;;  %vm2635_vm4 = vcmask 130048   ;;  %vm2638_vm5 = vcmask 195584  }
  0x2a   :  { %2847 = vmatprep.subr.mxu0 %v65_v3  ;;  %s3096_s17 = smov [#allocation8]  }
  0x2b   :  { %2848 = vmatpush3.msra.mxu0 %v65_v3  ;;  %v181_v21 = vunpack.c.0.s8 %v180_v19  ;;  %v213_v30 = vunpack.c.0.s8 %v212_v24  ;;  %s2740_s18 = sshll.u32 %s3096_s17, 4  ;;  %s2741_s18 = int_to_ptr.vmem [resolvable:$true] %s2740_s18 }
  0x2c   :  { %2849 = vmatprep.subr.mxu0 %v64_v4  ;;  %s3054_s19 = scalar_lea.vmem %s2741_s18, 256  ;;  %p3059_p2 = scmp.lt.s32.totalorder %s2741_s18, %s2741_s18 }
  0x2d   :  { %2850 = vmatpush3.msra.mxu0 %v64_v4  ;;  %v3184_v26 = vsub.s32 %v181_v21, %v3180_v22  ;;  %v3198_v37 = vsub.s32 %v213_v30, %v3180_v22  ;;  %p3055_p1 = scmp.ne.s32.totalorder %s2741_s18, %s3054_s19  ;;  %p3060_p3 = scmp.lt.s32.totalorder %s3054_s19, %s3054_s19 }
  0x2e   :  { %2852 = vmatmul.mubr.msk.f32.vlgmr.msra.gmra.mxu0 %vm75_vm0, %v63_v5  ;;  %2874 = vmatprep.subr.mxu0 %v3089_v17 }
  0x2f   :  { %2876 = vmatprep.mubr.msk.f32.mxu0 %vm3091_vm1, %v3089_v17  ;;  %p3061_p4 = por %p3060_p3, %p3059_p2 }
  0x31   :  { %p3062_p5 = pnand %p3061_p4, %p3055_p1 }
  0xee   :  { %v2853_v6 = vpop.f32.mrf.mxu0 }
  0xef   :  { %v3150_v10 = vadd.f32 %v2853_v6, %v2753_v7 }
  0xf0   :  { %v148_v8 = vpop.f32.mrf.mxu0 }
  0xf1   :  { %v149_v9 = vadd.f32 %v2753_v7, %v148_v8 }
  0xf3   :  { %171 = vrot.lane.b32.xlu1 %v149_v9, %s3085_s9  ;;  %159 = vrot.lane.b32.xlu0 %v149_v9, %s3086_s10 }
  0xf7   :  { %161 = vrot.lane.b32.xlu1 %v3150_v10, %s3086_s10  ;;  %165 = vrot.lane.b32.xlu0 %v149_v9, %s3087_s11 }
  0xfb   :  { %173 = vrot.lane.b32.xlu1 %v3150_v10, %s3085_s9  ;;  %167 = vrot.lane.b32.xlu0 %v3150_v10, %s3087_s11 }
  0xff   :  { %449 = vrot.lane.b32.xlu0 %v149_v9, %s3088_s12 }
 0x165   :  { %v3155_v11 = vpop.permute.xlu1 %171  ;;  %v160_v12 = vpop.permute.xlu0 %159 }
 0x166   :  { %453 = vrot.lane.b32.xlu1 %v160_v12, %s3088_s12  ;;  %v193_v27 = vcombine.low %v160_v12, %v3155_v11  ;;  %v194_v29 = vcombine.high %v160_v12, %v3155_v11 }
 0x168   :  { %v201_v32 = vrot.slane %v193_v27, %v3184_v26  ;;  %v208_v36 = vrot.slane %v194_v29, %v3184_v26 }
 0x169   :  { %v3157_v13 = vpop.permute.xlu0 %165  ;;  %v3161_v14 = vpop.permute.xlu1 %161 }
 0x16a   :  { %461 = vrot.lane.b32.xlu1 %v3155_v11, %s3088_s12  ;;  %457 = vrot.lane.b32.xlu0 %v3157_v13, %s3088_s12  ;;  %v177_v25 = vcombine.low %v149_v9, %v3157_v13  ;;  %v178_v28 = vcombine.high %v149_v9, %v3157_v13 }
 0x16c   :  { %v185_v31 = vrot.slane %v177_v25, %v3184_v26  ;;  %v192_v33 = vrot.slane %v178_v28, %v3184_v26 }
 0x16d   :  { %v3165_v15 = vpop.permute.xlu1 %173  ;;  %v3167_v16 = vpop.permute.xlu0 %167 }
 0x16e   :  { %455 = vrot.lane.b32.xlu1 %v3161_v14, %s3088_s12  ;;  %451 = vrot.lane.b32.xlu0 %v3150_v10, %s3088_s12  ;;  %v261_v34 = vcombine.low %v3161_v14, %v3165_v15  ;;  %v245_v35 = vcombine.low %v3150_v10, %v3167_v16  ;;  %v209_v38 = vcombine.low %v185_v31, %v201_v32 }
 0x16f   :  { %v210_v39 = vcombine.high %v185_v31, %v201_v32  ;;  %v262_v40 = vcombine.high %v3161_v14, %v3165_v15  ;;  %v246_v41 = vcombine.high %v3150_v10, %v3167_v16  ;;  %v225_v42 = vcombine.low %v192_v33, %v208_v36 }
 0x170   :  { %v226_v43 = vcombine.high %v192_v33, %v208_v36  ;;  %v269_v44 = vrot.slane %v261_v34, %v3184_v26  ;;  %v253_v45 = vrot.slane %v245_v35, %v3184_v26  ;;  %v217_v46 = vrot.slane %v209_v38, %v3198_v37 }
 0x171   :  { %v224_v47 = vrot.slane %v210_v39, %v3198_v37  ;;  %v276_v48 = vrot.slane %v262_v40, %v3184_v26  ;;  %v260_v49 = vrot.slane %v246_v41, %v3184_v26  ;;  %v233_v50 = vrot.slane %v225_v42, %v3198_v37  ;;  %v450_v54 = vpop.permute.xlu0 %449 }
 0x172   :  { %463 = vrot.lane.b32.xlu1 %v3165_v15, %s3088_s12  ;;  %459 = vrot.lane.b32.xlu0 %v3167_v16, %s3088_s12  ;;  %v240_v51 = vrot.slane %v226_v43, %v3198_v37  ;;  %v277_v52 = vcombine.low %v253_v45, %v269_v44  ;;  %v278_v53 = vcombine.high %v253_v45, %v269_v44 }
 0x173   :  { %v313_v56 = vcombine.low %v217_v46, %v224_v47  ;;  %v293_v57 = vcombine.low %v260_v49, %v276_v48  ;;  %v294_v58 = vcombine.high %v260_v49, %v276_v48  ;;  %v2756_v59 = vcombine.high %v217_v46, %v224_v47 }
 0x174   :  { %v329_v60 = vcombine.low %v233_v50, %v240_v51  ;;  %v2757_v61 = vcombine.high %v233_v50, %v240_v51  ;;  %v285_v62 = vrot.slane %v277_v52, %v3198_v37  ;;  %v292_v63 = vrot.slane %v278_v53, %v3198_v37 }
 0x175   :  { %v3215_v6 = vrot.slane %v293_v57, %v3198_v37  ;;  %v308_v7 = vrot.slane %v294_v58, %v3198_v37  ;;  %v3219_v8 = vrot.slane %v313_v56, %v3184_v26  ;;  %v3226_v24 = vrot.slane %v2756_v59, %v3184_v26 }
 0x176   :  { %745 = vrot.lane.b32.xlu1 %v149_v9, %s3090_s2  ;;  %749 = vrot.lane.b32.xlu0 %v160_v12, %s3090_s2  ;;  %v381_v21 = vcombine.low %v285_v62, %v292_v63  ;;  %v3229_v25 = vrot.slane %v329_v60, %v3184_v26  ;;  %v3232_v27 = vrot.slane %v2757_v61, %v3184_v26 }
 0x177   :  { %v2758_v33 = vcombine.high %v285_v62, %v292_v63  ;;  %v397_v34 = vcombine.low %v3215_v6, %v308_v7  ;;  %v2759_v41 = vcombine.high %v3215_v6, %v308_v7  ;;  %v345_v43 = vcombine.low %v3219_v8, %v3226_v24 }
 0x178   :  { %v3240_v40 = vrot.slane %v381_v21, %v3184_v26  ;;  %v361_v44 = vcombine.low %v3229_v25, %v3232_v27 }
 0x179   :  { %v3256_v62 = vrot.slane %v2758_v33, %v3184_v26  ;;  %v3259_v63 = vrot.slane %v397_v34, %v3184_v26 }
 0x1d8   :  { %v454_v55 = vpop.permute.xlu1 %453 }
 0x1dc   :  { %v462_v0 = vpop.permute.xlu1 %461  ;;  %v458_v1 = vpop.permute.xlu0 %457 }
 0x1dd   :  { %v489_v2 = vcombine.low %v454_v55, %v462_v0  ;;  %v490_v3 = vcombine.high %v454_v55, %v462_v0  ;;  %v473_v4 = vcombine.low %v450_v54, %v458_v1  ;;  %v474_v5 = vcombine.high %v450_v54, %v458_v1 }
 0x1df   :  { %v497_v9 = vrot.slane %v489_v2, %v3184_v26  ;;  %v504_v12 = vrot.slane %v490_v3, %v3184_v26  ;;  %v481_v18 = vrot.slane %v473_v4, %v3184_v26  ;;  %v488_v19 = vrot.slane %v474_v5, %v3184_v26 }
 0x1e0   :  { %v456_v23 = vpop.permute.xlu1 %455  ;;  %v452_v32 = vpop.permute.xlu0 %451 }
 0x1e1   :  { %v505_v28 = vcombine.low %v481_v18, %v497_v9  ;;  %v506_v29 = vcombine.high %v481_v18, %v497_v9  ;;  %v521_v30 = vcombine.low %v488_v19, %v504_v12  ;;  %v522_v31 = vcombine.high %v488_v19, %v504_v12 }
 0x1e2   :  { %v353_v9 = vrot.slane %v345_v43, %v3198_v37  ;;  %v369_v12 = vrot.slane %v361_v44, %v3198_v37 }
 0x1e3   :  { %v513_v35 = vrot.slane %v505_v28, %v3198_v37  ;;  %v520_v36 = vrot.slane %v506_v29, %v3198_v37  ;;  %v529_v38 = vrot.slane %v521_v30, %v3198_v37  ;;  %v536_v39 = vrot.slane %v522_v31, %v3198_v37 }
 0x1e4   :  { %v464_v42 = vpop.permute.xlu1 %463  ;;  %v460_v49 = vpop.permute.xlu0 %459  ;;  %v412_v28 = vrot.slane %v2759_v41, %v3184_v26 }
 0x1e5   :  { %v609_v45 = vcombine.low %v513_v35, %v520_v36  ;;  %v2760_v46 = vcombine.high %v513_v35, %v520_v36  ;;  %v625_v47 = vcombine.low %v529_v38, %v536_v39  ;;  %v2761_v48 = vcombine.high %v529_v38, %v536_v39 }
 0x1e6   :  { %v557_v50 = vcombine.low %v456_v23, %v464_v42  ;;  %v558_v51 = vcombine.high %v456_v23, %v464_v42  ;;  %v541_v52 = vcombine.low %v452_v32, %v460_v49  ;;  %v542_v53 = vcombine.high %v452_v32, %v460_v49 }
 0x1e7   :  { %v616_v54 = vrot.slane %v609_v45, %v3184_v26  ;;  %v624_v55 = vrot.slane %v2760_v46, %v3184_v26  ;;  %v632_v56 = vrot.slane %v625_v47, %v3184_v26  ;;  %v640_v57 = vrot.slane %v2761_v48, %v3184_v26 }
 0x1e8   :  { %v565_v58 = vrot.slane %v557_v50, %v3184_v26  ;;  %v572_v59 = vrot.slane %v558_v51, %v3184_v26  ;;  %v549_v60 = vrot.slane %v541_v52, %v3184_v26  ;;  %v556_v61 = vrot.slane %v542_v53, %v3184_v26 }
 0x1e9   :  { %v641_v0 = vcombine.low %v616_v54, %v624_v55  ;;  %v657_v1 = vcombine.low %v632_v56, %v640_v57  ;;  %v642_v29 = vcombine.high %v616_v54, %v624_v55  ;;  %v658_v30 = vcombine.high %v632_v56, %v640_v57 }
 0x1ea   :  { %v573_v2 = vcombine.low %v549_v60, %v565_v58  ;;  %v574_v3 = vcombine.high %v549_v60, %v565_v58  ;;  %v589_v4 = vcombine.low %v556_v61, %v572_v59  ;;  %v590_v5 = vcombine.high %v556_v61, %v572_v59 }
 0x1eb   :  { %v649_v6 = vrot.slane %v641_v0, %v3198_v37  ;;  %v665_v7 = vrot.slane %v657_v1, %v3198_v37  ;;  %v346_v36 = vcombine.high %v3219_v8, %v3226_v24  ;;  %v362_v38 = vcombine.high %v3229_v25, %v3232_v27 }
 0x1ec   :  { %v581_v18 = vrot.slane %v573_v2, %v3198_v37  ;;  %v588_v19 = vrot.slane %v574_v3, %v3198_v37  ;;  %v597_v21 = vrot.slane %v589_v4, %v3198_v37  ;;  %v604_v23 = vrot.slane %v590_v5, %v3198_v37 }
 0x1ed   :  { %v673_v31 = vcombine.low %v649_v6, %v665_v7  ;;  %v377_v39 = vcombine.low %v353_v9, %v369_v12  ;;  %v413_v42 = vcombine.low %v3240_v40, %v3256_v62  ;;  %v674_v46 = vcombine.high %v649_v6, %v665_v7 }
 0x1ee   :  { %v677_v32 = vcombine.low %v581_v18, %v588_v19  ;;  %v2762_v33 = vcombine.high %v581_v18, %v588_v19  ;;  %v693_v34 = vcombine.low %v597_v21, %v604_v23  ;;  %v2763_v35 = vcombine.high %v597_v21, %v604_v23 }
 0x1ef   :  { %2855 = vmatpush3.xpose.msk.msra.mxu1 %vm1041_vm2, %v673_v31  ;;  %v656_v8 = vrot.slane %v642_v29, %v3198_v37  ;;  %v672_v24 = vrot.slane %v658_v30, %v3198_v37  ;;  %v429_v25 = vcombine.low %v3259_v63, %v412_v28  ;;  %v360_v50 = vrot.slane %v346_v36, %v3198_v37 }
 0x1f0   :  { %v684_v41 = vrot.slane %v677_v32, %v3184_v26  ;;  %v692_v43 = vrot.slane %v2762_v33, %v3184_v26  ;;  %v700_v44 = vrot.slane %v693_v34, %v3184_v26  ;;  %v708_v45 = vrot.slane %v2763_v35, %v3184_v26  ;;  %2859 = vmatprep.subr.mxu1 %v3089_v17 }
 0x1f1   :  { %v376_v51 = vrot.slane %v362_v38, %v3198_v37  ;;  %v378_v52 = vcombine.high %v353_v9, %v369_v12  ;;  %v414_v55 = vcombine.high %v3240_v40, %v3256_v62  ;;  %v675_v56 = vcombine.low %v656_v8, %v672_v24 }
 0x1f2   :  { %v709_v27 = vcombine.low %v684_v41, %v692_v43  ;;  %v710_v47 = vcombine.high %v684_v41, %v692_v43  ;;  %v725_v48 = vcombine.low %v700_v44, %v708_v45  ;;  %v726_v49 = vcombine.high %v700_v44, %v708_v45  ;;  %2857 = vmatmul.mubr.msk.f32.vlgmr.msra.gmra.mxu1 %vm1041_vm2, %v377_v39 }
 0x1f3   :  { %2860 = vmatpush3.xpose.msk.msra.mxu1 %vm1041_vm2, %v674_v46  ;;  %2861 = vmatprep.mubr.msk.f32.mxu1 %vm3091_vm1, %v3089_v17  ;;  %v421_v57 = vrot.slane %v413_v42, %v3198_v37  ;;  %v437_v58 = vrot.slane %v429_v25, %v3198_v37  ;;  %v430_v59 = vcombine.high %v3259_v63, %v412_v28  ;;  %v1653_v18 = vand.u32 127, %v182_v20 }
 0x1f4   :  { %2864 = vmatprep.subr.mxu1 %v3089_v17  ;;  %v717_v53 = vrot.slane %v709_v27, %v3198_v37  ;;  %v733_v54 = vrot.slane %v725_v48, %v3198_v37  ;;  %v724_v61 = vrot.slane %v710_v47, %v3198_v37  ;;  %v740_v0 = vrot.slane %v726_v49, %v3198_v37 }
 0x1f5   :  { %v379_v40 = vcombine.low %v360_v50, %v376_v51  ;;  %v445_v62 = vcombine.low %v421_v57, %v437_v58  ;;  %v676_v63 = vcombine.high %v656_v8, %v672_v24  ;;  %v428_v1 = vrot.slane %v414_v55, %v3198_v37 }
 0x1f6   :  { %2862 = vmatmul.mubr.msk.f32.vlgmr.msra.gmra.mxu1 %vm1041_vm2, %v378_v52  ;;  %v741_v60 = vcombine.low %v717_v53, %v733_v54  ;;  %v444_v2 = vrot.slane %v430_v59, %v3198_v37  ;;  %v743_v3 = vcombine.low %v724_v61, %v740_v0  ;;  %v380_v4 = vcombine.high %v360_v50, %v376_v51 }
 0x1f7   :  { %2865 = vmatpush3.xpose.msk.msra.mxu1 %vm1041_vm2, %v675_v56  ;;  %2866 = vmatprep.mubr.msk.f32.mxu1 %vm3091_vm1, %v3089_v17  ;;  %v742_v6 = vcombine.high %v717_v53, %v733_v54  ;;  %v446_v7 = vcombine.high %v421_v57, %v437_v58  ;;  %v744_v9 = vcombine.high %v724_v61, %v740_v0  ;;  %v750_v54 = vpop.permute.xlu0 %749  ;;  %v746_v56 = vpop.permute.xlu1 %745 }
 0x1f8   :  { %2875 = vmatpush3.xpose.msk.msra.mxu0 %vm1041_vm2, %v741_v60  ;;  %2869 = vmatprep.subr.mxu1 %v3089_v17  ;;  %v447_v5 = vcombine.low %v428_v1, %v444_v2  ;;  %v448_v12 = vcombine.high %v428_v1, %v444_v2  ;;  %vm3338_vm3 = vcmp.le.s32.totalorder %v1653_v18, %v3180_v22 }
 0x1f9   :  { %2884 = vmatprep.subr.mxu0 %v3089_v17 }
 0x1fa   :  { %2867 = vmatmul.mubr.msk.f32.vlgmr.msra.gmra.mxu1 %vm1041_vm2, %v379_v40 }
 0x1fb   :  { %2877 = vmatmul.mubr.msk.f32.vlgmr.msra.gmra.mxu0 %vm1041_vm2, %v445_v62  ;;  %2870 = vmatpush3.xpose.msk.msra.mxu1 %vm1041_vm2, %v676_v63 }
 0x1fc   :  { %2885 = vmatpush3.xpose.msk.msra.mxu0 %vm1041_vm2, %v743_v3  ;;  %2871 = vmatprep.mubr.msk.f32.mxu1 %vm3091_vm1, %v3089_v17 }
 0x1fd   :  { %2886 = vmatprep.mubr.msk.f32.mxu0 %vm3091_vm1, %v3089_v17  ;;  %2879 = vmatprep.subr.mxu1 %v3089_v17 }
 0x1fe   :  { %2872 = vmatmul.mubr.msk.f32.vlgmr.msra.gmra.mxu1 %vm1041_vm2, %v380_v4  ;;  %2894 = vmatprep.subr.mxu0 %v3089_v17 }
 0x1ff   :  { %2887 = vmatmul.mubr.msk.f32.vlgmr.msra.gmra.mxu0 %vm1041_vm2, %v447_v5  ;;  %2880 = vmatpush3.xpose.msk.msra.mxu1 %vm1041_vm2, %v742_v6 }
 0x200   :  { %2881 = vmatprep.mubr.msk.f32.mxu1 %vm3091_vm1, %v3089_v17  ;;  %2889 = vmatprep.subr.mxu1 %v3089_v17 }
 0x201   :  { %2896 = vmatprep.mubr.msk.f32.mxu0 %vm3091_vm1, %v3089_v17 }
 0x202   :  { %2882 = vmatmul.mubr.msk.f32.vlgmr.msra.gmra.mxu1 %vm1041_vm2, %v446_v7 }
 0x203   :  { %2890 = vmatpush3.xpose.msk.msra.mxu1 %vm1041_vm2, %v744_v9  ;;  %2891 = vmatprep.mubr.msk.f32.mxu1 %vm3091_vm1, %v3089_v17 }
 0x204   :  { %2899 = vmatprep.subr.mxu1 %v3089_v17 }
 0x206   :  { %2892 = vmatmul.mubr.msk.f32.vlgmr.msra.gmra.mxu1 %vm1041_vm2, %v448_v12 }
 0x207   :  { %2901 = vmatprep.mubr.msk.f32.mxu1 %vm3091_vm1, %v3089_v17 }
 0x2b2   :  { %v1114_v21 = vpop.f32.mrf.mxu1 }
 0x2b3   :  { %v1657_v23 = vsel %vm3338_vm3, %v1114_v21, -1e+30 }
 0x2b4   :  { %v2858_v28 = vpop.f32.mrf.mxu1  ;;  %v1665_v29 = vsel %vm1041_vm2, %v1657_v23, -inf }
 0x2b5   :  { %1666 = vmax.xlane.f32.xlu0 %v1665_v29 }
 0x2b6   :  { %v1190_v30 = vpop.f32.mrf.mxu1 }
 0x2b7   :  { %v1658_v24 = vsel %vm3338_vm3, %v1190_v30, -1e+30 }
 0x2b8   :  { %v2863_v31 = vpop.f32.mrf.mxu1  ;;  %v1668_v49 = vsel %vm1041_vm2, %v1658_v24, -inf }
 0x2ba   :  { %v1266_v32 = vpop.f32.mrf.mxu1 }
 0x2bb   :  { %v1659_v33 = vsel %vm3338_vm3, %v1266_v32, -1e+30  ;;  %v1418_v20 = vpop.f32.mrf.mxu0 }
 0x2bc   :  { %v1661_v22 = vsel %vm3338_vm3, %v1418_v20, -1e+30  ;;  %v2868_v34 = vpop.f32.mrf.mxu1  ;;  %v1671_v35 = vsel %vm1041_vm2, %v1659_v33, -inf }
 0x2bd   :  { %v2878_v36 = vpop.f32.mrf.mxu0  ;;  %1672 = vmax.xlane.f32.xlu0 %v1671_v35  ;;  %v1677_v38 = vsel %vm1041_vm2, %v1661_v22, -inf }
 0x2be   :  { %1678 = vmax.xlane.f32.xlu1 %v1677_v38  ;;  %v1342_v39 = vpop.f32.mrf.mxu1 }
 0x2bf   :  { %v1660_v42 = vsel %vm3338_vm3, %v1342_v39, -1e+30  ;;  %v1570_v41 = vpop.f32.mrf.mxu0 }
 0x2c0   :  { %v1663_v43 = vsel %vm3338_vm3, %v1570_v41, -1e+30  ;;  %v2873_v44 = vpop.f32.mrf.mxu1  ;;  %v1674_v45 = vsel %vm1041_vm2, %v1660_v42, -inf }
 0x2c1   :  { %v2888_v46 = vpop.f32.mrf.mxu0  ;;  %1675 = vmax.xlane.f32.xlu0 %v1674_v45  ;;  %v1683_v8 = vsel %vm1041_vm2, %v1663_v43, -inf }
 0x2c2   :  { %1684 = vmax.xlane.f32.xlu1 %v1683_v8  ;;  %v1494_v25 = vpop.f32.mrf.mxu1 }
 0x2c3   :  { %v1662_v27 = vsel %vm3338_vm3, %v1494_v25, -1e+30 }
 0x2c4   :  { %v2883_v47 = vpop.f32.mrf.mxu1  ;;  %v1680_v48 = vsel %vm1041_vm2, %v1662_v27, -inf }
 0x2c5   :  { %1681 = vmax.xlane.f32.xlu0 %v1680_v48 }
 0x2c6   :  { %1669 = vmax.xlane.f32.xlu1 %v1668_v49  ;;  %v1646_v50 = vpop.f32.mrf.mxu1 }
 0x2c7   :  { %v1664_v51 = vsel %vm3338_vm3, %v1646_v50, -1e+30 }
 0x2c8   :  { %v2893_v52 = vpop.f32.mrf.mxu1  ;;  %v1686_v53 = vsel %vm1041_vm2, %v1664_v51, -inf }
 0x2c9   :  { %1687 = vmax.xlane.f32.xlu0 %v1686_v53 }
 0x2d7   :  { %753 = vrot.lane.b32.xlu1 %v3157_v13, %s3090_s2 }
 0x2db   :  { %757 = vrot.lane.b32.xlu1 %v3155_v11, %s3090_s2 }
 0x2df   :  { %751 = vrot.lane.b32.xlu1 %v3161_v14, %s3090_s2  ;;  %747 = vrot.lane.b32.xlu0 %v3150_v10, %s3090_s2 }
 0x33e   :  { %v1667_v55 = vpop.xlane.xlu0 %1666 }
 0x33f   :  { %v1689_v57 = vsub.f32 %v1657_v23, %v1667_v55 }
 0x341   :  { %v1697_v61 = vmul.f32 1.442695, %v1689_v57 }
 0x346   :  { %v1673_v58 = vpop.xlane.xlu0 %1672 }
 0x347   :  { %v1679_v59 = vpop.xlane.xlu1 %1678  ;;  %v1691_v0 = vsub.f32 %v1659_v33, %v1673_v58 }
 0x348   :  { %v1693_v60 = vsub.f32 %v1661_v22, %v1679_v59 }
 0x349   :  { %v1701_v63 = vmul.f32 1.442695, %v1691_v0 }
 0x34a   :  { %v1705_v40 = vmul.f32 1.442695, %v1693_v60  ;;  %v1676_v13 = vpop.xlane.xlu0 %1675 }
 0x34b   :  { %v1685_v62 = vpop.xlane.xlu1 %1684  ;;  %v1692_v1 = vsub.f32 %v1660_v42, %v1676_v13 }
 0x34c   :  { %2962 = vpow2.f32 %v1705_v40  ;;  %v1695_v11 = vsub.f32 %v1663_v43, %v1685_v62 }
 0x34d   :  { %2964 = vpow2.f32 %v1697_v61  ;;  %v1703_v4 = vmul.f32 1.442695, %v1692_v1 }
 0x34e   :  { %v1709_v14 = vmul.f32 1.442695, %v1695_v11  ;;  %v1682_v2 = vpop.xlane.xlu0 %1681 }
 0x34f   :  { %v1670_v10 = vpop.xlane.xlu1 %1669  ;;  %v1694_v7 = vsub.f32 %v1662_v27, %v1682_v2 }
 0x350   :  { %2966 = vpow2.f32 %v1709_v14  ;;  %v1690_v3 = vsub.f32 %v1658_v24, %v1670_v10 }
 0x351   :  { %2968 = vpow2.f32 %v1701_v63  ;;  %v1707_v23 = vmul.f32 1.442695, %v1694_v7 }
 0x352   :  { %v1699_v5 = vmul.f32 1.442695, %v1690_v3  ;;  %v1688_v6 = vpop.xlane.xlu0 %1687 }
 0x353   :  { %v754_v9 = vpop.permute.xlu1 %753  ;;  %v1696_v12 = vsub.f32 %v1664_v51, %v1688_v6 }
 0x354   :  { %2970 = vpow2.f32 %v1699_v5  ;;  %v769_v18 = vcombine.low %v746_v56, %v754_v9  ;;  %v770_v21 = vcombine.high %v746_v56, %v754_v9 }
 0x355   :  { %v1711_v19 = vmul.f32 1.442695, %v1696_v12  ;;  %2972 = vpow2.f32 %v1703_v4 }
 0x356   :  { %v777_v32 = vrot.slane %v769_v18, %v3184_v26  ;;  %v784_v20 = vrot.slane %v770_v21, %v3184_v26  ;;  %v748_v9 = vpop.permute.xlu0 %747 }
 0x357   :  { %2974 = vpow2.f32 %v1711_v19  ;;  %v758_v28 = vpop.permute.xlu1 %757 }
 0x358   :  { %v785_v29 = vcombine.low %v750_v54, %v758_v28  ;;  %v786_v30 = vcombine.high %v750_v54, %v758_v28  ;;  %2976 = vpow2.f32 %v1707_v23 }
 0x359   :  { %v3374_v31 = vpop.eup %2962 }
 0x35a   :  { %v3377_v33 = vpop.eup %2964  ;;  %v793_v22 = vrot.slane %v785_v29, %v3184_v26  ;;  %v800_v34 = vrot.slane %v786_v30, %v3184_v26  ;;  %v1725_v35 = vsel %vm1041_vm2, %v3374_v31, 0.0 }
 0x35b   :  { %1726 = vadd.xlane.f32.xlu1 %v1725_v35  ;;  %v1713_v43 = vsel %vm1041_vm2, %v3377_v33, 0.0  ;;  %v752_v6 = vpop.permute.xlu1 %751 }
 0x35c   :  { %v801_v36 = vcombine.low %v777_v32, %v793_v22  ;;  %v802_v38 = vcombine.high %v777_v32, %v793_v22  ;;  %v817_v39 = vcombine.low %v784_v20, %v800_v34  ;;  %v818_v42 = vcombine.high %v784_v20, %v800_v34 }
 0x35d   :  { %v3384_v41 = vpop.eup %2966 }
 0x35e   :  { %v3388_v44 = vpop.eup %2968  ;;  %v809_v45 = vrot.slane %v801_v36, %v3198_v37  ;;  %v816_v46 = vrot.slane %v802_v38, %v3198_v37  ;;  %v825_v8 = vrot.slane %v817_v39, %v3198_v37  ;;  %v832_v24 = vrot.slane %v818_v42, %v3198_v37 }
 0x35f   :  { %v1731_v25 = vsel %vm1041_vm2, %v3384_v41, 0.0  ;;  %1714 = vadd.xlane.f32.xlu1 %v1713_v43  ;;  %v1719_v51 = vsel %vm1041_vm2, %v3388_v44, 0.0 }
 0x360   :  { %v905_v27 = vcombine.low %v809_v45, %v816_v46  ;;  %v2764_v47 = vcombine.high %v809_v45, %v816_v46  ;;  %v921_v48 = vcombine.low %v825_v8, %v832_v24  ;;  %v2765_v49 = vcombine.high %v825_v8, %v832_v24  ;;  %1732 = vadd.xlane.f32.xlu0 %v1731_v25 }
 0x361   :  { %v3396_v50 = vpop.eup %2970 }
 0x362   :  { %v912_v52 = vrot.slane %v905_v27, %v3184_v26  ;;  %v920_v53 = vrot.slane %v2764_v47, %v3184_v26  ;;  %v928_v54 = vrot.slane %v921_v48, %v3184_v26  ;;  %v936_v55 = vrot.slane %v2765_v49, %v3184_v26  ;;  %v3404_v56 = vpop.eup %2972 }
 0x363   :  { %v1716_v57 = vsel %vm1041_vm2, %v3396_v50, 0.0  ;;  %1720 = vadd.xlane.f32.xlu1 %v1719_v51  ;;  %v1722_v14 = vsel %vm1041_vm2, %v3404_v56, 0.0 }
 0x364   :  { %v3408_v58 = vpop.eup %2974  ;;  %1717 = vadd.xlane.f32.xlu0 %v1716_v57  ;;  %v937_v59 = vcombine.low %v912_v52, %v920_v53  ;;  %v953_v60 = vcombine.low %v928_v54, %v936_v55  ;;  %v938_v61 = vcombine.high %v912_v52, %v920_v53  ;;  %v954_v0 = vcombine.high %v928_v54, %v936_v55 }
 0x365   :  { %v1734_v40 = vsel %vm1041_vm2, %v3408_v58, 0.0  ;;  %v3420_v1 = vpop.eup %2976 }
 0x366   :  { %v945_v13 = vrot.slane %v937_v59, %v3198_v37  ;;  %v961_v62 = vrot.slane %v953_v60, %v3198_v37  ;;  %v3415_v11 = vrot.slane %v938_v61, %v3198_v37  ;;  %v968_v63 = vrot.slane %v954_v0, %v3198_v37 }
 0x367   :  { %1735 = vadd.xlane.f32.xlu1 %v1734_v40  ;;  %v1728_v5 = vsel %vm1041_vm2, %v3420_v1, 0.0 }
 0x368   :  { %1723 = vadd.xlane.f32.xlu0 %v1722_v14  ;;  %v969_v2 = vcombine.low %v945_v13, %v961_v62  ;;  %v970_v10 = vcombine.high %v945_v13, %v961_v62  ;;  %v971_v3 = vcombine.low %v3415_v11, %v968_v63  ;;  %v972_v4 = vcombine.high %v3415_v11, %v968_v63 }
 0x36a   :  { %2895 = vmatpush3.msra.mxu0 %v969_v2  ;;  %2900 = vmatpush3.msra.mxu1 %v970_v10 }
 0x36b   :  { %2904 = vmatprep.subr.mxu0 %v3089_v17  ;;  %2909 = vmatprep.subr.mxu1 %v3089_v17 }
 0x36c   :  { %1729 = vadd.xlane.f32.xlu0 %v1728_v5 }
 0x378   :  { %759 = vrot.lane.b32.xlu1 %v3165_v15, %s3090_s2 }
 0x382   :  { %755 = vrot.lane.b32.xlu0 %v3167_v16, %s3090_s2 }
 0x3e4   :  { %v1727_v7 = vpop.xlane.xlu1 %1726 }
 0x3e8   :  { %v1715_v12 = vpop.xlane.xlu1 %1714 }
 0x3e9   :  { %2978 = vrcp.f32 %v1715_v12  ;;  %v1733_v18 = vpop.xlane.xlu0 %1732 }
 0x3ec   :  { %v1721_v19 = vpop.xlane.xlu1 %1720 }
 0x3ed   :  { %2980 = vrcp.f32 %v1721_v19  ;;  %v1718_v21 = vpop.xlane.xlu0 %1717 }
 0x3ee   :  { %2982 = vrcp.f32 %v1718_v21 }
 0x3f0   :  { %v1736_v23 = vpop.xlane.xlu1 %1735 }
 0x3f1   :  { %v1724_v28 = vpop.xlane.xlu0 %1723 }
 0x3f2   :  { %2984 = vrcp.f32 %v1724_v28 }
 0x3f3   :  { %2986 = vrcp.f32 %v1727_v7 }
 0x3f4   :  { %v760_v29 = vpop.permute.xlu1 %759 }
 0x3f5   :  { %v1730_v30 = vpop.xlane.xlu0 %1729  ;;  %v853_v15 = vcombine.low %v752_v6, %v760_v29  ;;  %v854_v16 = vcombine.high %v752_v6, %v760_v29 }
 0x3f6   :  { %v2979_v32 = vpop.eup %2978  ;;  %2988 = vrcp.f32 %v1730_v30 }
 0x3f7   :  { %v1738_v20 = vmul.f32 %v2979_v32, %v3377_v33  ;;  %v861_v39 = vrot.slane %v853_v15, %v3184_v26  ;;  %v868_v33 = vrot.slane %v854_v16, %v3184_v26  ;;  %2990 = vrcp.f32 %v1733_v18 }
 0x3f8   :  { %2992 = vrcp.f32 %v1736_v23 }
 0x3f9   :  { %v756_v22 = vpop.permute.xlu0 %755  ;;  %2897 = vmatmul.mubr.msk.f32.vlgmr.msra.gmra.mxu0 %vm1041_vm2, %v1738_v20 }
 0x3fa   :  { %v2981_v34 = vpop.eup %2980  ;;  %v837_v35 = vcombine.low %v748_v9, %v756_v22  ;;  %v838_v36 = vcombine.high %v748_v9, %v756_v22  ;;  %2905 = vmatpush3.msra.mxu0 %v971_v3  ;;  %2906 = vmatprep.mubr.msk.f32.mxu0 %vm3091_vm1, %v3089_v17 }
 0x3fb   :  { %v2983_v38 = vpop.eup %2982  ;;  %v1742_v42 = vmul.f32 %v2981_v34, %v3388_v44  ;;  %2914 = vmatprep.subr.mxu0 %v3089_v17 }
 0x3fc   :  { %v845_v43 = vrot.slane %v837_v35, %v3184_v26  ;;  %v852_v45 = vrot.slane %v838_v36, %v3184_v26  ;;  %v1740_v46 = vmul.f32 %v2983_v38, %v3396_v50 }
 0x3fd   :  { %2907 = vmatmul.mubr.msk.f32.vlgmr.msra.gmra.mxu0 %vm1041_vm2, %v1742_v42 }
 0x3fe   :  { %v869_v8 = vcombine.low %v845_v43, %v861_v39  ;;  %v870_v24 = vcombine.high %v845_v43, %v861_v39  ;;  %v885_v25 = vcombine.low %v852_v45, %v868_v33  ;;  %v886_v27 = vcombine.high %v852_v45, %v868_v33  ;;  %2902 = vmatmul.mubr.msk.f32.vlgmr.msra.gmra.mxu1 %vm1041_vm2, %v1740_v46 }
 0x3ff   :  { %v2985_v44 = vpop.eup %2984  ;;  %2910 = vmatpush3.msra.mxu1 %v972_v4  ;;  %2911 = vmatprep.mubr.msk.f32.mxu1 %vm3091_vm1, %v3089_v17 }
 0x400   :  { %v877_v47 = vrot.slane %v869_v8, %v3198_v37  ;;  %v884_v48 = vrot.slane %v870_v24, %v3198_v37  ;;  %v893_v49 = vrot.slane %v885_v25, %v3198_v37  ;;  %v900_v50 = vrot.slane %v886_v27, %v3198_v37  ;;  %2919 = vmatprep.subr.mxu1 %v3089_v17  ;;  %v2987_v62 = vpop.eup %2986 }
 0x401   :  { %v1744_v51 = vmul.f32 %v2985_v44, %v3404_v56  ;;  %2916 = vmatprep.mubr.msk.f32.mxu0 %vm3091_vm1, %v3089_v17  ;;  %v1746_v6 = vmul.f32 %v2987_v62, %v3374_v31 }
 0x402   :  { %v973_v52 = vcombine.low %v877_v47, %v884_v48  ;;  %v2766_v53 = vcombine.high %v877_v47, %v884_v48  ;;  %v989_v54 = vcombine.low %v893_v49, %v900_v50  ;;  %v2767_v55 = vcombine.high %v893_v49, %v900_v50 }
 0x403   :  { %2912 = vmatmul.mubr.msk.f32.vlgmr.msra.gmra.mxu1 %vm1041_vm2, %v1744_v51  ;;  %v2989_v11 = vpop.eup %2988 }
 0x404   :  { %v980_v57 = vrot.slane %v973_v52, %v3184_v26  ;;  %v988_v59 = vrot.slane %v2766_v53, %v3184_v26  ;;  %v996_v60 = vrot.slane %v989_v54, %v3184_v26  ;;  %v1004_v61 = vrot.slane %v2767_v55, %v3184_v26  ;;  %2921 = vmatprep.mubr.msk.f32.mxu1 %vm3091_vm1, %v3089_v17  ;;  %v2991_v3 = vpop.eup %2990 }
 0x405   :  { %v1748_v7 = vmul.f32 %v2989_v11, %v3420_v1  ;;  %v2993_v9 = vpop.eup %2992  ;;  %v1750_v19 = vmul.f32 %v2991_v3, %v3384_v41 }
 0x406   :  { %v1005_v56 = vcombine.low %v980_v57, %v988_v59  ;;  %v1021_v0 = vcombine.low %v996_v60, %v1004_v61  ;;  %v1006_v40 = vcombine.high %v980_v57, %v988_v59  ;;  %v1022_v13 = vcombine.high %v996_v60, %v1004_v61 }
 0x407   :  { %v1752_v31 = vmul.f32 %v2993_v9, %v3408_v58 }
 0x408   :  { %v1013_v63 = vrot.slane %v1005_v56, %v3198_v37  ;;  %v1029_v14 = vrot.slane %v1021_v0, %v3198_v37  ;;  %v1020_v2 = vrot.slane %v1006_v40, %v3198_v37  ;;  %v1036_v10 = vrot.slane %v1022_v13, %v3198_v37 }
 0x40a   :  { %v1037_v4 = vcombine.low %v1013_v63, %v1029_v14  ;;  %v1038_v5 = vcombine.high %v1013_v63, %v1029_v14  ;;  %v1039_v12 = vcombine.low %v1020_v2, %v1036_v10  ;;  %v1040_v18 = vcombine.high %v1020_v2, %v1036_v10 }
 0x40c   :  { %2915 = vmatpush3.msra.mxu0 %v1037_v4  ;;  %2920 = vmatpush3.msra.mxu1 %v1038_v5 }
 0x40d   :  { %2917 = vmatmul.mubr.msk.f32.vlgmr.msra.gmra.mxu0 %vm1041_vm2, %v1746_v6  ;;  %2922 = vmatmul.mubr.msk.f32.vlgmr.msra.gmra.mxu1 %vm1041_vm2, %v1748_v7 }
 0x40e   :  { %2924 = vmatprep.subr.mxu0 %v3089_v17  ;;  %2929 = vmatprep.subr.mxu1 %v3089_v17 }
 0x40f   :  { %2925 = vmatpush3.msra.mxu0 %v1039_v12  ;;  %2930 = vmatpush3.msra.mxu1 %v1040_v18 }
 0x410   :  { %2926 = vmatprep.mubr.msk.f32.mxu0 %vm3091_vm1, %v3089_v17  ;;  %2931 = vmatprep.mubr.msk.f32.mxu1 %vm3091_vm1, %v3089_v17 }
 0x411   :  { %2927 = vmatmul.mubr.msk.f32.vlgmr.msra.gmra.mxu0 %vm1041_vm2, %v1750_v19  ;;  %2932 = vmatmul.mubr.msk.f32.vlgmr.msra.gmra.mxu1 %vm1041_vm2, %v1752_v31 }
 0x4b9   :  { %v1822_v1 = vpop.f32.mrf.mxu0 }
 0x4bb   :  { %v2898_v21 = vpop.f32.mrf.mxu0 }
 0x4bc   :  { %v2643_v21 = vld [vmem:[#allocation7 + $0x10] sm:$0xff] }
 0x4bd   :  { %v1968_v23 = vpop.f32.mrf.mxu0 }
 0x4be   :  { %v1895_v28 = vpop.f32.mrf.mxu1  ;;  %v2337_v32 = vcombine.low %v1822_v1, %v1968_v23  ;;  %v2338_v41 = vcombine.high %v1822_v1, %v1968_v23  ;;  %v2644_v1 = vld [vmem:[#allocation7 + $0x18] sm:$0xff] }
 0x4bf   :  { %v2908_v29 = vpop.f32.mrf.mxu0  ;;  %2934 = vmatprep.subr.mxu0 %v2644_v1 }
 0x4c0   :  { %v2903_v30 = vpop.f32.mrf.mxu1  ;;  %v2345_v22 = vrot.slane %v2337_v32, %v3184_v26  ;;  %v2352_v17 = vrot.slane %v2338_v41, %v3184_v26  ;;  %2935 = vmatpush3.msra.mxu0 %v2644_v1 }
 0x4c1   :  { %2936 = vmatprep.subr.mxu0 %v2643_v21 }
 0x4c2   :  { %2937 = vmatpush3.msra.mxu0 %v2643_v21 }
 0x4c3   :  { %v2041_v15 = vpop.f32.mrf.mxu1 }
 0x4c4   :  { %v2353_v58 = vcombine.low %v1895_v28, %v2041_v15  ;;  %v2354_v20 = vcombine.high %v1895_v28, %v2041_v15 }
 0x4c5   :  { %v2913_v16 = vpop.f32.mrf.mxu1 }
 0x4c6   :  { %v2361_v34 = vrot.slane %v2353_v58, %v3184_v26  ;;  %v2368_v35 = vrot.slane %v2354_v20, %v3184_v26  ;;  %v2642_v16 = vld [vmem:[#allocation7 + $0x8] sm:$0xff] }
 0x4c7   :  { %2938 = vmatprep.subr.mxu0 %v2642_v16 }
 0x4c8   :  { %v2369_v36 = vcombine.low %v2345_v22, %v2361_v34  ;;  %v2370_v38 = vcombine.high %v2345_v22, %v2361_v34  ;;  %v2385_v39 = vcombine.low %v2352_v17, %v2368_v35  ;;  %v2386_v42 = vcombine.high %v2352_v17, %v2368_v35  ;;  %v2641_v22 = vld [vmem:[#allocation7] sm:$0xff]  ;;  %2939 = vmatpush3.msra.mxu0 %v2642_v16 }
 0x4c9   :  { %2940 = vmatprep.subr.mxu0 %v2641_v22 }
 0x4ca   :  { %v2377_v33 = vrot.slane %v2369_v36, %v3198_v37  ;;  %v2384_v43 = vrot.slane %v2370_v38, %v3198_v37  ;;  %v2393_v45 = vrot.slane %v2385_v39, %v3198_v37  ;;  %v2400_v46 = vrot.slane %v2386_v42, %v3198_v37  ;;  %2941 = vmatpush3.msra.mxu0 %v2641_v22 }
 0x4cc   :  { %v2473_v8 = vcombine.low %v2377_v33, %v2384_v43  ;;  %v2792_v24 = vcombine.high %v2377_v33, %v2384_v43  ;;  %v2489_v25 = vcombine.low %v2393_v45, %v2400_v46  ;;  %v2793_v27 = vcombine.high %v2393_v45, %v2400_v46 }
 0x4cd   :  { %v2114_v44 = vpop.f32.mrf.mxu0  ;;  %v2187_v47 = vpop.f32.mrf.mxu1 }
 0x4ce   :  { %v2480_v48 = vrot.slane %v2473_v8, %v3184_v26  ;;  %v2488_v49 = vrot.slane %v2792_v24, %v3184_v26  ;;  %v2496_v50 = vrot.slane %v2489_v25, %v3184_v26  ;;  %v2504_v51 = vrot.slane %v2793_v27, %v3184_v26 }
 0x4cf   :  { %v2918_v52 = vpop.f32.mrf.mxu0  ;;  %v2923_v53 = vpop.f32.mrf.mxu1 }
 0x4d0   :  { %v2505_v54 = vcombine.low %v2480_v48, %v2488_v49  ;;  %v2521_v55 = vcombine.low %v2496_v50, %v2504_v51  ;;  %v2506_v60 = vcombine.high %v2480_v48, %v2488_v49  ;;  %v2522_v61 = vcombine.high %v2496_v50, %v2504_v51 }
 0x4d1   :  { %v2260_v57 = vpop.f32.mrf.mxu0  ;;  %v2333_v59 = vpop.f32.mrf.mxu1 }
 0x4d2   :  { %v2405_v56 = vcombine.low %v2114_v44, %v2260_v57  ;;  %v2406_v0 = vcombine.high %v2114_v44, %v2260_v57  ;;  %v2421_v40 = vcombine.low %v2187_v47, %v2333_v59  ;;  %v2422_v13 = vcombine.high %v2187_v47, %v2333_v59 }
 0x4d3   :  { %v2928_v62 = vpop.f32.mrf.mxu0  ;;  %v2933_v11 = vpop.f32.mrf.mxu1  ;;  %v3493_v63 = vrot.slane %v2505_v54, %v3198_v37  ;;  %v3496_v14 = vrot.slane %v2521_v55, %v3198_v37  ;;  %v2520_v7 = vrot.slane %v2506_v60, %v3198_v37  ;;  %v2536_v9 = vrot.slane %v2522_v61, %v3198_v37  ;;  %v2796_v60 = vld [vmem:[%s3541_s4] ss:$0 sm:$0xff] }
 0x4d4   :  { %v2413_v2 = vrot.slane %v2405_v56, %v3184_v26  ;;  %v2420_v10 = vrot.slane %v2406_v0, %v3184_v26  ;;  %v2429_v3 = vrot.slane %v2421_v40, %v3184_v26  ;;  %v2436_v4 = vrot.slane %v2422_v13, %v3184_v26 }
 0x4d5   :  { %v2538_v5 = vcombine.high %v3493_v63, %v3496_v14  ;;  %v2537_v6 = vcombine.low %v3493_v63, %v3496_v14  ;;  %v2539_v32 = vcombine.low %v2520_v7, %v2536_v9  ;;  %v2540_v38 = vcombine.high %v2520_v7, %v2536_v9 }
 0x4d6   :  { %v2437_v12 = vcombine.low %v2413_v2, %v2429_v3  ;;  %v2438_v18 = vcombine.high %v2413_v2, %v2429_v3  ;;  %v2453_v19 = vcombine.low %v2420_v10, %v2436_v4  ;;  %v2454_v31 = vcombine.high %v2420_v10, %v2436_v4 }
 0x4d7   :  { %2611 = vrot.lane.b32.xlu0 %v2538_v5, %s3083_s24 }
 0x4d8   :  { %v2445_v23 = vrot.slane %v2437_v12, %v3198_v37  ;;  %v2452_v28 = vrot.slane %v2438_v18, %v3198_v37  ;;  %v2461_v29 = vrot.slane %v2453_v19, %v3198_v37  ;;  %v2468_v30 = vrot.slane %v2454_v31, %v3198_v37 }
 0x4da   :  { %v2541_v41 = vcombine.low %v2445_v23, %v2452_v28  ;;  %v2794_v15 = vcombine.high %v2445_v23, %v2452_v28  ;;  %v2557_v58 = vcombine.low %v2461_v29, %v2468_v30  ;;  %v2795_v20 = vcombine.high %v2461_v29, %v2468_v30 }
 0x4db   :  { %2619 = vrot.lane.b32.xlu0 %v2539_v32, %s3094_s13 }
 0x4dc   :  { %v2548_v17 = vrot.slane %v2541_v41, %v3184_v26  ;;  %v2556_v34 = vrot.slane %v2794_v15, %v3184_v26  ;;  %v2564_v35 = vrot.slane %v2557_v58, %v3184_v26  ;;  %v2572_v36 = vrot.slane %v2795_v20, %v3184_v26 }
 0x4de   :  { %v2573_v39 = vcombine.low %v2548_v17, %v2556_v34  ;;  %v2589_v42 = vcombine.low %v2564_v35, %v2572_v36  ;;  %v2574_v33 = vcombine.high %v2548_v17, %v2556_v34  ;;  %v2590_v43 = vcombine.high %v2564_v35, %v2572_v36 }
 0x4df   :  { %2627 = vrot.lane.b32.xlu0 %v2540_v38, %s3095_s14 }
 0x4e0   :  { %v2581_v45 = vrot.slane %v2573_v39, %v3198_v37  ;;  %v2597_v46 = vrot.slane %v2589_v42, %v3198_v37  ;;  %v2588_v25 = vrot.slane %v2574_v33, %v3198_v37  ;;  %v2604_v26 = vrot.slane %v2590_v43, %v3198_v37 }
 0x4e2   :  { %v2606_v8 = vcombine.high %v2581_v45, %v2597_v46  ;;  %v2605_v24 = vcombine.low %v2581_v45, %v2597_v46  ;;  %v2607_v27 = vcombine.low %v2588_v25, %v2604_v26  ;;  %v2608_v44 = vcombine.high %v2588_v25, %v2604_v26 }
 0x4e4   :  { %2613 = vrot.lane.b32.xlu1 %v2606_v8, %s3083_s24 }
 0x4e8   :  { %2621 = vrot.lane.b32.xlu1 %v2607_v27, %s3094_s13 }
 0x4ec   :  { %2629 = vrot.lane.b32.xlu1 %v2608_v44, %s3095_s14 }
 0x549   :  { %v2612_v47 = vpop.permute.xlu0 %2611 }
 0x54a   :  { %v2633_v49 = vsel %vm1041_vm2, %v2537_v6, %v2612_v47 }
 0x54d   :  { %v2620_v48 = vpop.permute.xlu0 %2619 }
 0x54e   :  { %v2636_v50 = vsel %vm2635_vm4, %v2633_v49, %v2620_v48 }
 0x551   :  { %v2628_v51 = vpop.permute.xlu0 %2627 }
 0x552   :  { %v2639_v52 = vsel %vm2638_vm5, %v2636_v50, %v2628_v51 }
 0x553   :  { %2942 = vmatprep.mubr.msk.f32.mxu0 %vm75_vm0, %v2639_v52 }
 0x556   :  { %v2614_v53 = vpop.permute.xlu1 %2613 }
 0x557   :  { %v2634_v37 = vsel %vm1041_vm2, %v2605_v24, %v2614_v53 }
 0x55a   :  { %v2622_v54 = vpop.permute.xlu1 %2621 }
 0x55b   :  { %v2637_v55 = vsel %vm2635_vm4, %v2634_v37, %v2622_v54 }
 0x55e   :  { %v2630_v57 = vpop.permute.xlu1 %2629 }
 0x55f   :  { %v2640_v59 = vsel %vm2638_vm5, %v2637_v55, %v2630_v57 }
 0x560   :  { %2943 = vmatmul.mubr.msk.f32.vlgmr.msra.gmra.mxu0 %vm75_vm0, %v2640_v59 }
 0x620   :  { %v2944_v61 = vpop.f32.mrf.mxu0 }
 0x621   :  { %v2730_v56 = vadd.f32 %v2944_v61, %v2796_v60 }
 0x622   :  { %v2724_v0 = vpop.f32.mrf.mxu0 }
 0x623   :  { %2734 = vst.msk [vmem:[#allocation8 + $0x8] sm:$0xff] %vm75_vm0, %v2730_v56  ;;  %v2725_v40 = vadd.f32 %v2796_v60, %v2724_v0 }
 0x625   :  { %2733 = vst.msk [vmem:[#allocation8] sm:$0xff] %vm75_vm0, %v2725_v40 }
 0x626   :  { %3065 = shalt.err (!%p3062_p5)
}
 0x627   :  { %2746 = dma.vmem_to_hbm [thread:$0]  %s2741_s18, 256, %s3542_s5, [#allocation4], %s3082_s23, %s3082_s23, %s3083_s24  }
 0x628   :  { %3078 = dma.done.wait [#allocation4], 256  }
 0x629   :  { %3079 = vsyncadd [#allocation4], 4294967040 }
 0x62a   :  { %2750 = vsyncpa [#allocation3], 1 }
 0x62b   :  { %2751 = vsyncpa [#allocation6], 1 }
 0x62c   :  { %2752 = vsyncpa [#allocation4], 1 }

</bundles_post_ra>
